<compile_context>
chip_gen: v6e
topology: v6e:2x2x1
jax: 0.10.0
libtpu: 0.0.40
codegen_flags: <defaults>
</compile_context>

<pallas_src>
import functools

import numpy as np
import jax
import jax.numpy as jnp
from jax.experimental import pallas as pl
from jax.experimental.pallas import tpu as pltpu


# ----------------------------- Pallas kernel -------------------------------

def _fused_seg_kernel(p_ref, w1_ref, b1_ref, w2_ref, b2_ref, bt_ref, o_ref,
                      *, n_imgs, howo):
    """Whole batch, one step: conv(as matmul)+ReLU -> 1x1 conv -> bilinear up.

    p_ref : (Cin*9, N*HoWo)  bf16 im2col patches, taps x (batch-folded) pixels
    w1_ref: (hidden, Cin*9)  bf16 backbone conv weight, flattened
    b1_ref: (hidden, 1)      f32
    w2_ref: (c_pad, hidden)  bf16 classifier weight, classes zero-padded to 8
    b2_ref: (c_pad, 1)       f32
    bt_ref: (HoWo, H*W)      bf16 kron(Ah, Aw)^T bilinear operator
    o_ref : (N, c_pad, H*W)  NCHW-flat output (lane dim = H*W, dense store)
    """
    # Backbone conv as one folded matmul (bf16 in, f32 acc) + bias + ReLU.
    feats = jnp.dot(w1_ref[...], p_ref[...],
                    preferred_element_type=jnp.float32)       # (hidden, N*HoWo) f32
    feats = jnp.maximum(feats + b1_ref[...], 0.0)              # f32 VPU work
    feats = feats.astype(jnp.bfloat16)

    # Classifier 1x1 conv as one folded matmul + bias (f32).
    logits = jnp.dot(w2_ref[...], feats,
                     preferred_element_type=jnp.float32) + b2_ref[...]  # (c_pad, N*HoWo)

    # Bilinear upsample (align_corners=False) per image: static lane slice of
    # the folded logits, one MXU matmul with kron(Ah,Aw)^T, lane-dense store.
    bt = bt_ref[...]
    for n in range(n_imgs):                                    # static unroll (N small)
        block = logits[:, n * howo:(n + 1) * howo].astype(jnp.bfloat16)  # (c_pad, HoWo)
        up = jnp.dot(block, bt, preferred_element_type=jnp.float32)      # (c_pad, H*W)
        o_ref[n] = up.astype(o_ref.dtype)


# ----------------------------- glue / wrapper -------------------------------

def _bilinear_matrix_np(out_size, in_size):
    """numpy interpolation matrix matching F.interpolate(bilinear, align_corners=False)."""
    scale = in_size / out_size
    out_idx = np.arange(out_size)
    src = (out_idx + 0.5) * scale - 0.5
    src = np.maximum(src, 0.0)                        # PyTorch clamps negatives to 0
    x0 = np.minimum(np.floor(src).astype(np.int64), in_size - 1)
    x1 = np.minimum(x0 + 1, in_size - 1)
    w1 = (src - x0).astype(np.float32)
    w0 = 1.0 - w1
    A = np.zeros((out_size, in_size), np.float32)
    A[out_idx, x0] += w0
    A[out_idx, x1] += w1
    return A


def segmentation_model(x, w_backbone, b_backbone, w_cls, b_cls):
    """Forward pass of SegmentationModel.

    backbone  : Conv2d(Cin -> hidden, k=3, stride=2, pad=1) + ReLU
    classifier: Conv2d(hidden -> num_classes, k=1)
    then F.interpolate(..., size=input_shape, mode='bilinear', align_corners=False)
    """
    N, Cin, H, W = x.shape
    hidden = w_backbone.shape[0]
    num_classes = w_cls.shape[0]
    k, stride, pad = 3, 2, 1
    Ho = (H + 2 * pad - k) // stride + 1
    Wo = (W + 2 * pad - k) // stride + 1
    HoWo, HW = Ho * Wo, H * W
    c_pad = ((num_classes + 7) // 8) * 8        # sublane-aligned classes (mult of 8)

    # --- im2col for the 3x3 / stride-2 / pad-1 conv, batch folded into the
    #     pixel dim: (Cin*9, N*HoWo), rows ordered (cin, kh, kw) to match the
    #     weight flatten, columns ordered (n, ho, wo).  Tiny XLA glue here. ---
    xp = jnp.pad(x, ((0, 0), (0, 0), (pad, pad), (pad, pad)))
    taps = [xp[:, :, di:di + stride * Ho:stride, dj:dj + stride * Wo:stride]
            for di in range(k) for dj in range(k)]            # 9 x (N, Cin, Ho, Wo)
    patches = (jnp.stack(taps, axis=2)                        # (N, Cin, 9, Ho, Wo)
               .transpose(1, 2, 0, 3, 4)                      # (Cin, 9, N, Ho, Wo)
               .reshape(Cin * k * k, N * HoWo)
               .astype(jnp.bfloat16))

    # --- weights, bf16 for the MXU, biases kept f32 for the VPU ---
    w1 = w_backbone.reshape(hidden, Cin * k * k).astype(jnp.bfloat16)
    b1 = b_backbone.reshape(hidden, 1).astype(jnp.float32)
    w2 = jnp.pad(w_cls, ((0, c_pad - num_classes), (0, 0))).astype(jnp.bfloat16)
    b2 = jnp.pad(b_cls, (0, c_pad - num_classes)).reshape(c_pad, 1).astype(jnp.float32)

    # --- static bilinear operator, built host-side (compile-time constant) ---
    ah = _bilinear_matrix_np(H, Ho)                           # (H, Ho)
    aw = _bilinear_matrix_np(W, Wo)                           # (W, Wo)
    bt = jnp.asarray(np.kron(ah, aw).T, dtype=jnp.bfloat16)   # (HoWo, H*W)

    kernel = functools.partial(_fused_seg_kernel, n_imgs=N, howo=HoWo)
    out_flat = pl.pallas_call(
        kernel,
        out_shape=jax.ShapeDtypeStruct((N, c_pad, HW), x.dtype),
        grid_spec=pltpu.PrefetchScalarGridSpec(
            num_scalar_prefetch=0,
            grid=(1,),
            in_specs=[
                pl.BlockSpec((Cin * k * k, N * HoWo), lambda i: (0, 0)),
                pl.BlockSpec((hidden, Cin * k * k), lambda i: (0, 0)),
                pl.BlockSpec((hidden, 1), lambda i: (0, 0)),
                pl.BlockSpec((c_pad, hidden), lambda i: (0, 0)),
                pl.BlockSpec((c_pad, 1), lambda i: (0, 0)),
                pl.BlockSpec((HoWo, HW), lambda i: (0, 0)),
            ],
            out_specs=pl.BlockSpec((N, c_pad, HW), lambda i: (0, 0, 0)),
        ),
        compiler_params=pltpu.CompilerParams(
            dimension_semantics=("arbitrary",)),
    )(patches, w1, b1, w2, b2, bt)

    # Drop the class padding; (N, C, H*W) -> (N, C, H, W) is a free reshape.
    return out_flat[:, :num_classes, :].reshape(N, num_classes, H, W)


# --------------------------------- main -------------------------------------

if __name__ == "__main__":
    key = jax.random.PRNGKey(0)
    N, Cin, H, W = 2, 4, 16, 16
    hidden, num_classes = 32, 5

    k1, k2, k3, k4, k5 = jax.random.split(key, 5)
    x = jax.random.normal(k1, (N, Cin, H, W), jnp.float32)
    w_backbone = jax.random.normal(k2, (hidden, Cin, 3, 3), jnp.float32) * 0.1
    b_backbone = jax.random.normal(k3, (hidden,), jnp.float32) * 0.1
    w_cls = jax.random.normal(k4, (num_classes, hidden), jnp.float32) * 0.1
    b_cls = jax.random.normal(k5, (num_classes,), jnp.float32) * 0.1

    fwd = jax.jit(segmentation_model)
    out = jax.block_until_ready(fwd(x, w_backbone, b_backbone, w_cls, b_cls))
    assert out.shape == (N, num_classes, H, W), out.shape
    assert bool(jnp.all(jnp.isfinite(out)))
    print("KERNEL_OK")
</pallas_src>

<mosaic_0001>
module attributes {stable_mosaic.version = 11 : i64} {
  func.func @_fused_seg_kernel(%arg0: i32, %arg1: memref<36x128xbf16, #tpu.memory_space<vmem>>, %arg2: memref<32x36xbf16, #tpu.memory_space<vmem>>, %arg3: memref<32x1xf32, #tpu.memory_space<vmem>>, %arg4: memref<8x32xbf16, #tpu.memory_space<vmem>>, %arg5: memref<8x1xf32, #tpu.memory_space<vmem>>, %arg6: memref<64x256xbf16, #tpu.memory_space<vmem>>, %arg7: memref<2x8x256xf32, #tpu.memory_space<vmem>>) attributes {dimension_semantics = [#tpu.dimension_semantics<arbitrary>], iteration_bounds = array<i64: 1>, scalar_prefetch = 0 : i64, scratch_operands = 0 : i64, tpu.core_type = #tpu.core_type<tc>, window_params = [{pipeline_mode = #tpu.pipeline_mode<synchronous>, transform_indices = @transform_0, window_bounds = array<i64: 36, 128>}, {pipeline_mode = #tpu.pipeline_mode<synchronous>, transform_indices = @transform_1, window_bounds = array<i64: 32, 36>}, {pipeline_mode = #tpu.pipeline_mode<synchronous>, transform_indices = @transform_2, window_bounds = array<i64: 32, 1>}, {pipeline_mode = #tpu.pipeline_mode<synchronous>, transform_indices = @transform_3, window_bounds = array<i64: 8, 32>}, {pipeline_mode = #tpu.pipeline_mode<synchronous>, transform_indices = @transform_4, window_bounds = array<i64: 8, 1>}, {pipeline_mode = #tpu.pipeline_mode<synchronous>, transform_indices = @transform_5, window_bounds = array<i64: 64, 256>}, {pipeline_mode = #tpu.pipeline_mode<synchronous>, transform_indices = @transform_6, window_bounds = array<i64: 2, 8, 256>}]} {
    %c0 = arith.constant 0 : index
    %c0_0 = arith.constant 0 : index
    %0 = vector.load %arg2[%c0, %c0_0] : memref<32x36xbf16, #tpu.memory_space<vmem>>, vector<32x36xbf16>
    %c0_1 = arith.constant 0 : index
    %c0_2 = arith.constant 0 : index
    %1 = vector.load %arg1[%c0_1, %c0_2] : memref<36x128xbf16, #tpu.memory_space<vmem>>, vector<36x128xbf16>
    %cst = arith.constant dense<0.000000e+00> : vector<32x128xf32>
    %2 = tpu.matmul %0, %1, %cst {dimension_numbers = #tpu.dot_dimension_numbers<[1], [0], [0], [1], [0, 0, 1, 1], [], []>} : vector<32x36xbf16>, vector<36x128xbf16>, vector<32x128xf32> -> vector<32x128xf32>
    %c0_3 = arith.constant 0 : index
    %c0_4 = arith.constant 0 : index
    %3 = vector.load %arg3[%c0_3, %c0_4] : memref<32x1xf32, #tpu.memory_space<vmem>>, vector<32x1xf32>
    %4 = vector.broadcast %3 : vector<32x1xf32> to vector<32x128xf32>
    %5 = arith.addf %2, %4 : vector<32x128xf32>
    %cst_5 = arith.constant 0.000000e+00 : f32
    %6 = vector.broadcast %cst_5 : f32 to vector<32x128xf32>
    %7 = arith.maximumf %5, %6 : vector<32x128xf32>
    %8 = arith.truncf %7 : vector<32x128xf32> to vector<32x128xbf16>
    %c0_6 = arith.constant 0 : index
    %c0_7 = arith.constant 0 : index
    %9 = vector.load %arg4[%c0_6, %c0_7] : memref<8x32xbf16, #tpu.memory_space<vmem>>, vector<8x32xbf16>
    %cst_8 = arith.constant dense<0.000000e+00> : vector<8x128xf32>
    %10 = tpu.matmul %9, %8, %cst_8 {dimension_numbers = #tpu.dot_dimension_numbers<[1], [0], [0], [1], [0, 0, 1, 1], [], []>} : vector<8x32xbf16>, vector<32x128xbf16>, vector<8x128xf32> -> vector<8x128xf32>
    %c0_9 = arith.constant 0 : index
    %c0_10 = arith.constant 0 : index
    %11 = vector.load %arg5[%c0_9, %c0_10] : memref<8x1xf32, #tpu.memory_space<vmem>>, vector<8x1xf32>
    %12 = vector.broadcast %11 : vector<8x1xf32> to vector<8x128xf32>
    %13 = arith.addf %10, %12 : vector<8x128xf32>
    %c0_11 = arith.constant 0 : index
    %c0_12 = arith.constant 0 : index
    %14 = vector.load %arg6[%c0_11, %c0_12] : memref<64x256xbf16, #tpu.memory_space<vmem>>, vector<64x256xbf16>
    %15 = vector.extract_strided_slice %13 {offsets = [0, 0], sizes = [8, 64], strides = [1, 1]} : vector<8x128xf32> to vector<8x64xf32>
    %16 = arith.truncf %15 : vector<8x64xf32> to vector<8x64xbf16>
    %cst_13 = arith.constant dense<0.000000e+00> : vector<8x256xf32>
    %17 = tpu.matmul %16, %14, %cst_13 {dimension_numbers = #tpu.dot_dimension_numbers<[1], [0], [0], [1], [0, 0, 1, 1], [], []>} : vector<8x64xbf16>, vector<64x256xbf16>, vector<8x256xf32> -> vector<8x256xf32>
    %c0_14 = arith.constant 0 : index
    %c0_15 = arith.constant 0 : index
    %c0_16 = arith.constant 0 : index
    %18 = vector.load %arg7[%c0_14, %c0_15, %c0_16] : memref<2x8x256xf32, #tpu.memory_space<vmem>>, vector<1x8x256xf32>
    %19 = vector.shape_cast %18 : vector<1x8x256xf32> to vector<8x256xf32>
    %20 = vector.shape_cast %17 : vector<8x256xf32> to vector<1x8x256xf32>
    tpu.vector_store %arg7[%c0_14, %c0_15, %c0_16], %20 {strides = array<i32>} : memref<2x8x256xf32, #tpu.memory_space<vmem>>, vector<1x8x256xf32>,
    %21 = vector.extract_strided_slice %13 {offsets = [0, 64], sizes = [8, 64], strides = [1, 1]} : vector<8x128xf32> to vector<8x64xf32>
    %22 = arith.truncf %21 : vector<8x64xf32> to vector<8x64xbf16>
    %cst_17 = arith.constant dense<0.000000e+00> : vector<8x256xf32>
    %23 = tpu.matmul %22, %14, %cst_17 {dimension_numbers = #tpu.dot_dimension_numbers<[1], [0], [0], [1], [0, 0, 1, 1], [], []>} : vector<8x64xbf16>, vector<64x256xbf16>, vector<8x256xf32> -> vector<8x256xf32>
    %c1 = arith.constant 1 : index
    %c0_18 = arith.constant 0 : index
    %c0_19 = arith.constant 0 : index
    %24 = vector.load %arg7[%c1, %c0_18, %c0_19] : memref<2x8x256xf32, #tpu.memory_space<vmem>>, vector<1x8x256xf32>
    %25 = vector.shape_cast %24 : vector<1x8x256xf32> to vector<8x256xf32>
    %26 = vector.shape_cast %23 : vector<8x256xf32> to vector<1x8x256xf32>
    tpu.vector_store %arg7[%c1, %c0_18, %c0_19], %26 {strides = array<i32>} : memref<2x8x256xf32, #tpu.memory_space<vmem>>, vector<1x8x256xf32>,
    return
  }
  func.func @transform_0(%arg0: i32) -> (i32, i32) {
    %c0_i32 = arith.constant 0 : i32
    %c0_i32_0 = arith.constant 0 : i32
    %c0_i32_1 = arith.constant 0 : i32
    return %c0_i32, %c0_i32_0 : i32, i32
  }
  func.func @transform_1(%arg0: i32) -> (i32, i32) {
    %c0_i32 = arith.constant 0 : i32
    %c0_i32_0 = arith.constant 0 : i32
    %c0_i32_1 = arith.constant 0 : i32
    return %c0_i32, %c0_i32_0 : i32, i32
  }
  func.func @transform_2(%arg0: i32) -> (i32, i32) {
    %c0_i32 = arith.constant 0 : i32
    %c0_i32_0 = arith.constant 0 : i32
    %c0_i32_1 = arith.constant 0 : i32
    return %c0_i32, %c0_i32_0 : i32, i32
  }
  func.func @transform_3(%arg0: i32) -> (i32, i32) {
    %c0_i32 = arith.constant 0 : i32
    %c0_i32_0 = arith.constant 0 : i32
    %c0_i32_1 = arith.constant 0 : i32
    return %c0_i32, %c0_i32_0 : i32, i32
  }
  func.func @transform_4(%arg0: i32) -> (i32, i32) {
    %c0_i32 = arith.constant 0 : i32
    %c0_i32_0 = arith.constant 0 : i32
    %c0_i32_1 = arith.constant 0 : i32
    return %c0_i32, %c0_i32_0 : i32, i32
  }
  func.func @transform_5(%arg0: i32) -> (i32, i32) {
    %c0_i32 = arith.constant 0 : i32
    %c0_i32_0 = arith.constant 0 : i32
    %c0_i32_1 = arith.constant 0 : i32
    return %c0_i32, %c0_i32_0 : i32, i32
  }
  func.func @transform_6(%arg0: i32) -> (i32, i32, i32) {
    %c0_i32 = arith.constant 0 : i32
    %c0_i32_0 = arith.constant 0 : i32
    %c0_i32_1 = arith.constant 0 : i32
    %c0_i32_2 = arith.constant 0 : i32
    return %c0_i32, %c0_i32_0, %c0_i32_1 : i32, i32, i32
  }
}

</mosaic_0001>

<bundles_post_ra>
// kernel: segmentation_model.1
= control target key start
LH: loop header
LB: loop body
LE: loop exit
PB: predicated region body
PF: predicated region fallthrough
CT: control target
= control target key end

     0   :  { %vm89_vm0 = vcmask 1041408   ;;  %v419_v2 = vmov 0   ;;  %vm82_vm1 = vcmask 293888   ;;  %v420_v12 = vmov 0.0   ;;  %s533_s0 = inlined_call_operand.vmem [shape: bf16[36,128], index: 0, kind: input, shape index: {}]   ;;  %s534_s1 = inlined_call_operand.vmem [shape: bf16[32,36], index: 1, kind: input, shape index: {}]   ;;  %s535_s2 = inlined_call_operand.vmem [shape: f32[32,1], index: 2, kind: input, shape index: {}]   ;;  %s536_s4 = inlined_call_operand.vmem [shape: f32[8,1], index: 4, kind: input, shape index: {}]   ;;  %s537_s5 = inlined_call_operand.vmem [shape: bf16[64,256], index: 5, kind: input, shape index: {}]   ;;  %s538_s3 = inlined_call_operand.vmem [shape: bf16[8,32], index: 3, kind: input, shape index: {}]   ;;  %s539_s6 = inlined_call_operand.vmem [shape: f32[2,8,256], index: 6, kind: output, shape index: {}]  }
   0x1   :  { %v402_v0 = vld [vmem:[%s533_s0 + $0x10] ss:$0 sps:$4 sm:$0x33]   ;;  %v403_v1 = vld [vmem:[%s533_s0 + $0x8] sm:$0xff]   ;;  %400 = vset.pattern.permute.xlu0 %v419_v2  ;;  %401 = vset.pattern.permute.xlu1 %v419_v2  ;;  %v405_v4 = vld [vmem:[%s534_s1] sm:$0xff]   ;;  %vm421_vm2 = vmmov 0  }
   0x2   :  { %395 = vmatprep.subr.msk.bf16.mxu0 %vm89_vm0, %v402_v0  ;;  %v91_v3 = vsel %vm89_vm0, %v402_v0, 0  ;;  %v404_v5 = vld [vmem:[%s533_s0] sm:$0xff]   ;;  %v35_v6 = vld [vmem:[%s535_s2 + $0x10] sm:$0xff]  ;;  %383 = vmatprep.mubr.msk.bf16.mxu0 %vm82_vm1, %v405_v4  ;;  %v36_v8 = vld [vmem:[%s535_s2 + $0x18] sm:$0xff]  ;;  %vm155_vm3 = vcmask 261120   ;;  %vm248_vm4 = vcmask 523264  }
   0x3   :  { %378 = vmatpush3.bf16.msra.mxu0 %v91_v3  ;;  %49 = vperm.xlu0 %400, %v35_v6   ;;  %v33_v7 = vld [vmem:[%s535_s2] sm:$0xff]  ;;  %v34_v9 = vld [vmem:[%s535_s2 + $0x8] sm:$0xff]  ;;  %v409_v13 = vld [vmem:[%s537_s5 + $0x34] ss:$8 sps:$4 sm:$0xff]  }
   0x4   :  { %379 = vmatprep.subr.bf16.mxu0 %v403_v1  ;;  %39 = vperm.xlu1 %401, %v33_v7   ;;  %v406_v10 = vld [vmem:[%s534_s1 + $0x8] sm:$0xff]   ;;  %v149_v11 = vld [vmem:[%s536_s4] sm:$0xff]  ;;  %v407_v14 = vld [vmem:[%s537_s5 + $0x30] ss:$8 sps:$4 sm:$0xff]  }
   0x5   :  { %387 = vmatprep.subr.bf16.mxu1 %v420_v12  ;;  %391 = vmatprep.mubr.msk.bf16.mxu1 %vm421_vm2, %v420_v12  ;;  %v412_v15 = vld [vmem:[%s537_s5 + $0x24] ss:$8 sps:$4 sm:$0xff]   ;;  %v410_v16 = vld [vmem:[%s537_s5 + $0x20] ss:$8 sps:$4 sm:$0xff]   ;;  %v415_v17 = vld [vmem:[%s537_s5 + $0x14] ss:$8 sps:$4 sm:$0xff]  }
   0x6   :  { %v413_v18 = vld [vmem:[%s537_s5 + $0x10] ss:$8 sps:$4 sm:$0xff]   ;;  %v148_v37 = vld [vmem:[%s538_s3] sm:$0xf]  ;;  %v418_v38 = vld [vmem:[%s537_s5 + $0x4] ss:$8 sps:$4 sm:$0xff]  }
   0x7   :  { %380 = vmatpush3.bf16.msra.mxu0 %v403_v1  ;;  %54 = vperm.xlu0 %400, %v36_v8   ;;  %v416_v39 = vld [vmem:[%s537_s5] ss:$8 sps:$4 sm:$0xff]   ;;  %s422_s3 = smov 64  }
   0x8   :  { %381 = vmatprep.subr.bf16.mxu0 %v404_v5  ;;  %44 = vperm.xlu1 %401, %v34_v9  }
   0xb   :  { %382 = vmatpush3.bf16.msra.mxu0 %v404_v5  ;;  %152 = vperm.xlu0 %400, %v149_v11  }
   0xc   :  { %309 = vmatprep.subr.bf16.mxu0 %v409_v13 }
   0xe   :  { %384 = vmatmul.mubr.msk.bf16.vlgmr.msra.gmra.mxu0 %vm82_vm1, %v406_v10 }
   0xf   :  { %333 = vmatprep.mubr.bf16.mxu0 %v419_v2  ;;  %310 = vmatpush1.bf16.msra.mxu0 %v407_v14 }
  0x10   :  { %311 = vmatprep.subr.bf16.mxu0 %v412_v15 }
  0x13   :  { %312 = vmatpush1.bf16.msra.mxu0 %v410_v16 }
  0x14   :  { %313 = vmatprep.subr.bf16.mxu0 %v415_v17 }
  0x17   :  { %314 = vmatpush1.bf16.msra.mxu0 %v413_v18 }
  0x18   :  { %315 = vmatprep.subr.bf16.mxu0 %v418_v38 }
  0x1b   :  { %316 = vmatpush1.bf16.msra.mxu0 %v416_v39 }
  0x7e   :  { %v50_v19 = vpop.permute.xlu0 %49 }
  0x7f   :  { %v40_v20 = vpop.permute.xlu1 %39 }
  0x82   :  { %v55_v24 = vpop.permute.xlu0 %54 }
  0x83   :  { %v45_v27 = vpop.permute.xlu1 %44 }
  0x86   :  { %v153_v40 = vpop.permute.xlu0 %152 }
  0xce   :  { %v385_v21 = vpop.f32.mrf.mxu0 }
  0xcf   :  { %v136_v23 = vadd.f32 %v385_v21, %v50_v19 }
  0xd0   :  { %v127_v22 = vpop.f32.mrf.mxu0 }
  0xd1   :  { %v144_v29 = vmax.f32 %v136_v23, 0.0  ;;  %v128_v30 = vadd.f32 %v127_v22, %v40_v20 }
  0xd2   :  { %v386_v25 = vpop.f32.mrf.mxu0 }
  0xd3   :  { %v139_v26 = vadd.f32 %v386_v25, %v55_v24  ;;  %v142_v35 = vmax.f32 %v128_v30, 0.0 }
  0xd4   :  { %v130_v28 = vpop.f32.mrf.mxu0 }
  0xd5   :  { %v145_v31 = vmax.f32 %v139_v26, 0.0  ;;  %v131_v32 = vadd.f32 %v130_v28, %v45_v27 }
  0xd7   :  { %v143_v33 = vmax.f32 %v131_v32, 0.0  ;;  %v147_v34 = vpack.c.bf16 %v145_v31, %v144_v29 }
  0xd9   :  { %388 = vmatpush3.bf16.msra.mxu1 %v147_v34  ;;  %v146_v36 = vpack.c.bf16 %v143_v33, %v142_v35 }
  0xda   :  { %389 = vmatprep.subr.bf16.mxu1 %v420_v12 }
  0xdd   :  { %390 = vmatpush3.bf16.msra.mxu1 %v146_v36 }
  0xde   :  { %260 = vmatprep.subr.bf16.mxu1 %v409_v13 }
  0xe0   :  { %392 = vmatmul.mubr.msk.bf16.vlgmr.msra.gmra.mxu1 %vm155_vm3, %v148_v37 }
  0xe1   :  { %261 = vmatpush1.bf16.msra.mxu1 %v407_v14  ;;  %284 = vmatprep.mubr.bf16.mxu1 %v419_v2 }
  0xe2   :  { %262 = vmatprep.subr.bf16.mxu1 %v412_v15 }
  0xe5   :  { %263 = vmatpush1.bf16.msra.mxu1 %v410_v16 }
  0xe6   :  { %264 = vmatprep.subr.bf16.mxu1 %v415_v17 }
  0xe9   :  { %265 = vmatpush1.bf16.msra.mxu1 %v413_v18 }
  0xea   :  { %266 = vmatprep.subr.bf16.mxu1 %v418_v38 }
  0xed   :  { %267 = vmatpush1.bf16.msra.mxu1 %v416_v39 }
 0x1a0   :  { %v193_v41 = vpop.f32.mrf.mxu1 }
 0x1a1   :  { %v194_v42 = vadd.f32 %v193_v41, %v153_v40 }
 0x1a2   :  { %v393_v43 = vpop.f32.mrf.mxu1 }
 0x1a3   :  { %v207_v44 = vpack.c.bf16 %v194_v42, %v194_v42 }
 0x1a4   :  { %v196_v45 = vpop.f32.mrf.mxu1 }
 0x1a5   :  { %296 = vrot.lane.b32.xlu1 %v207_v44, %s422_s3  ;;  %365 = vmatmul.mubr.msk.bf16.vlgmr.msra.gmra.mxu1 %vm248_vm4, %v207_v44 }
 0x1a6   :  { %v394_v46 = vpop.f32.mrf.mxu1 }
 0x217   :  { %v297_v47 = vpop.permute.xlu1 %296 }
 0x218   :  { %366 = vmatmul.mubr.msk.bf16.vlgmr.msra.gmra.mxu0 %vm248_vm4, %v297_v47 }
 0x265   :  { %v286_v48 = vpop.f32.mrf.mxu1 }
 0x266   :  { %293 = vst [vmem:[%s539_s6] sm:$0xff] %v286_v48 }
 0x267   :  { %v288_v49 = vpop.f32.mrf.mxu1 }
 0x268   :  { %294 = vst [vmem:[%s539_s6 + $0x8] sm:$0xff] %v288_v49 }
 0x269   :  { %v290_v50 = vpop.f32.mrf.mxu1 }
 0x26b   :  { %v291_v51 = vpop.f32.mrf.mxu1 }
 0x2d8   :  { %v335_v52 = vpop.f32.mrf.mxu0 }
 0x2d9   :  { %367 = vst [vmem:[%s539_s6 + $0x10] sm:$0xff] %v335_v52 }
 0x2da   :  { %v337_v53 = vpop.f32.mrf.mxu0 }
 0x2db   :  { %368 = vst [vmem:[%s539_s6 + $0x18] sm:$0xff] %v337_v53 }
 0x2dc   :  { %v339_v54 = vpop.f32.mrf.mxu0 }
 0x2de   :  { %v340_v55 = vpop.f32.mrf.mxu0 }

</bundles_post_ra>
